<compile_context>
chip_gen: v7x
topology: tpu7x:2x2x1
jax: 0.10.0
libtpu: 0.0.40
codegen_flags: <defaults>
</compile_context>

<pallas_src>
import jax
import jax.numpy as jnp
from jax.experimental import pallas as pl
from jax.experimental.pallas import tpu as pltpu


def _round_up(a: int, b: int) -> int:
    return -(-a // b) * b


def _w8a16_kernel(x_ref, w_ref, scale_ref, bias_ref, o_ref, acc_ref):
    # x_ref:     (tm, tk)  bf16   activation tile
    # w_ref:     (tk, tn)  int8   quantized weight tile, already (K, N) layout
    # scale_ref: (1, tn)   f32    per-output-channel scale (lane-aligned row)
    # bias_ref:  (1, tn)   f32
    # o_ref:     (tm, tn)  bf16   output tile
    # acc_ref:   (tm, tn)  f32    VMEM accumulator scratch
    k = pl.program_id(2)

    @pl.when(k == 0)
    def _init():
        acc_ref[...] = jnp.zeros_like(acc_ref)

    # MXU matmul on the raw int8 tile (cast only; int8 is exact in bf16).
    # Per-channel scale is deferred to the f32 accumulator below.
    acc_ref[...] += jax.lax.dot_general(
        x_ref[...], w_ref[...].astype(x_ref.dtype),
        dimension_numbers=(((1,), (0,)), ((), ())),
        preferred_element_type=jnp.float32,
    )

    @pl.when(k == pl.num_programs(2) - 1)
    def _finalize():
        acc = acc_ref[...] * scale_ref[...] + bias_ref[...]
        o_ref[...] = acc.astype(o_ref.dtype)


def prepare_quantized_linear(quant_w, weight_scale, bias=None, *,
                             tile_n=512, tile_k=1024):
    """One-time weight-load-time relayout (hoisted out of the forward path).

    quant_w:      (N, K) int8  quantized weight (torch Linear layout)
    weight_scale: (N,)         per-output-channel scale
    bias:         (N,)         optional
    """
    N, K = quant_w.shape
    tn = min(tile_n, _round_up(N, 256))
    tk = min(tile_k, _round_up(K, 256))
    Np = _round_up(N, tn)
    Kp = _round_up(K, tk)

    # Transpose to (K, N) so the kernel contraction is plain NN (no per-step
    # relayout through the XLU), and zero-pad to tile multiples once.
    # TODO(synk): optionally pre-tile into contiguous (Kp//tk, tk, tn) slabs so
    # every weight DMA is a single fully-contiguous burst.
    w_kn = jnp.transpose(quant_w)
    if (Kp, Np) != (K, N):
        w_kn = jnp.pad(w_kn, ((0, Kp - K), (0, Np - N)))

    scale_row = weight_scale.astype(jnp.float32).reshape(1, N)
    if bias is None:
        bias_row = jnp.zeros((1, N), jnp.float32)
    else:
        bias_row = bias.astype(jnp.float32).reshape(1, N)
    if Np != N:
        scale_row = jnp.pad(scale_row, ((0, 0), (0, Np - N)))
        bias_row = jnp.pad(bias_row, ((0, 0), (0, Np - N)))

    return {"w_kn": w_kn, "scale_row": scale_row, "bias_row": bias_row,
            "n": N, "k": K, "tn": tn, "tk": tk}


def quantized_linear(x, params, *, tile_m=512, weight_buffers=None):
    """W8A16 linear forward using weights prepared by prepare_quantized_linear.

    x: (..., K) bf16/f32 activations.
    """
    N, K = params["n"], params["k"]
    tn, tk = params["tn"], params["tk"]
    w_kn, scale_row, bias_row = params["w_kn"], params["scale_row"], params["bias_row"]
    Kp, Np = w_kn.shape

    *lead, Kx = x.shape
    assert Kx == K, f"expected last dim {K}, got {Kx}"
    out_dtype = x.dtype

    x2d = x.reshape(-1, K)
    M = x2d.shape[0]
    tm = min(tile_m, _round_up(M, 256))
    Mp = _round_up(M, tm)
    if (Mp, Kp) != (M, K):
        x2d = jnp.pad(x2d, ((0, Mp - M), (0, Kp - K)))

    # Leading parallel axis is N so both v7x TensorCores get disjoint slices of
    # the weight stream even when there is only a single M tile (decode).
    grid = (Np // tn, Mp // tm, Kp // tk)

    # VMEM budget: double-buffered pipelined inputs/outputs + f32 accumulator.
    if weight_buffers is None:
        weight_buffers = 3 if (tk * tn >= 256 * 1024 and grid[2] > 1) else 2

    def _vmem_bytes(wb):
        return (2 * tm * tk * 2        # x tiles (bf16, double-buffered)
                + wb * tk * tn * 1     # int8 weight tiles
                + 2 * 2 * tn * 4       # scale + bias rows (f32)
                + 2 * tm * tn * 2      # output tiles
                + tm * tn * 4)         # f32 accumulator scratch

    if _vmem_bytes(weight_buffers) > 40 * 1024 * 1024:
        weight_buffers = 2
    # Raise the scoped-VMEM limit (v5e defaults to 16 MiB) but stay well under
    # v7x's 64 MiB physical VMEM.
    vmem_limit = min(48 * 1024 * 1024,
                     max(32 * 1024 * 1024, 2 * _vmem_bytes(weight_buffers)))

    w_index_map = lambda j, i, k: (k, j)
    w_spec = pl.BlockSpec((tk, tn), w_index_map)
    if weight_buffers > 2 and hasattr(pl, "Buffered"):
        try:  # deeper pipelining of the big weight DMAs, if supported
            w_spec = pl.BlockSpec((tk, tn), w_index_map,
                                  pipeline_mode=pl.Buffered(weight_buffers))
        except TypeError:
            pass

    cost = pl.CostEstimate(
        flops=2 * Mp * Np * Kp,
        transcendentals=0,
        bytes_accessed=(Mp * Kp * 2 * (Np // tn)      # activations, re-read per N tile
                        + Kp * Np * 1 * (Mp // tm)    # int8 weights, re-read per M tile
                        + Mp * Np * 2                 # output
                        + 2 * Np * 4),                # scale + bias
    )

    out2d = pl.pallas_call(
        _w8a16_kernel,
        out_shape=jax.ShapeDtypeStruct((Mp, Np), out_dtype),
        grid_spec=pltpu.PrefetchScalarGridSpec(
            num_scalar_prefetch=0,
            grid=grid,
            in_specs=[
                pl.BlockSpec((tm, tk), lambda j, i, k: (i, k)),   # activations
                w_spec,                                           # int8 weight (K, N)
                pl.BlockSpec((1, tn), lambda j, i, k: (0, j)),    # per-channel scale
                pl.BlockSpec((1, tn), lambda j, i, k: (0, j)),    # bias
            ],
            out_specs=pl.BlockSpec((tm, tn), lambda j, i, k: (i, j)),
            scratch_shapes=[pltpu.VMEM((tm, tn), jnp.float32)],
        ),
        compiler_params=pltpu.CompilerParams(
            dimension_semantics=("parallel", "parallel", "arbitrary"),
            vmem_limit_bytes=vmem_limit,
        ),
        cost_estimate=cost,
    )(x2d, w_kn, scale_row, bias_row)

    if (Mp, Np) != (M, N):
        out2d = out2d[:M, :N]
    return out2d.reshape(*lead, N)


def quantize_weight_int8(w_float, scale_dtype=jnp.bfloat16):
    """Mirror of QuantizedLinear.__init__ (weight_bit_width=8)."""
    scale = jnp.max(jnp.abs(w_float), axis=-1) / 127.0              # (N,)
    scale = jnp.maximum(scale, jnp.finfo(jnp.float32).tiny)         # guard all-zero rows
    q = jnp.clip(jnp.round(w_float / scale[:, None]), -127.0, 127.0).astype(jnp.int8)
    return q, scale.astype(scale_dtype)


def _reference(x, quant_w, weight_scale, bias):
    """Pure-JAX reference with the original W8A16 semantics (dequant then matmul)."""
    *lead, K = x.shape
    N = quant_w.shape[0]
    w_deq = quant_w.astype(weight_scale.dtype) * weight_scale[:, None]
    out = x.reshape(-1, K).astype(jnp.float32) @ w_deq.T.astype(jnp.float32)
    if bias is not None:
        out = out + bias.astype(jnp.float32)
    return out.reshape(*lead, N)


if __name__ == "__main__":
    key = jax.random.PRNGKey(0)
    k_x, k_w, k_b, k_x2 = jax.random.split(key, 4)

    # Small transformer-linear-like shapes: (batch, seq, hidden).
    batch, seq, in_features, out_features = 2, 8, 256, 512

    x = jax.random.normal(k_x, (batch, seq, in_features), jnp.float32).astype(jnp.bfloat16)
    w_float = jax.random.normal(k_w, (out_features, in_features), jnp.float32)
    bias = jax.random.normal(k_b, (out_features,), jnp.float32).astype(jnp.bfloat16)

    quant_w, weight_scale = quantize_weight_int8(w_float)

    # Weight relayout happens exactly once, at "load" time.
    params = prepare_quantized_linear(quant_w, weight_scale, bias)

    out = jax.block_until_ready(quantized_linear(x, params))
    ref = _reference(x, quant_w, weight_scale, bias)
    assert out.shape == (batch, seq, out_features)
    assert jnp.allclose(out.astype(jnp.float32), ref, atol=1.0, rtol=2e-2)

    # Re-use the prepared weights with a different, non-tile-multiple batch.
    x_b = jax.random.normal(k_x2, (3, 5, in_features), jnp.float32).astype(jnp.bfloat16)
    out_b = jax.block_until_ready(quantized_linear(x_b, params))
    ref_b = _reference(x_b, quant_w, weight_scale, bias)
    assert out_b.shape == (3, 5, out_features)
    assert jnp.allclose(out_b.astype(jnp.float32), ref_b, atol=1.0, rtol=2e-2)

    # Non-tile-multiple K and N exercise the weight-side padding path.
    n2, k2 = 300, 200
    w2 = jax.random.normal(k_w, (n2, k2), jnp.float32)
    b2 = jax.random.normal(k_b, (n2,), jnp.float32).astype(jnp.bfloat16)
    q2, s2 = quantize_weight_int8(w2)
    params2 = prepare_quantized_linear(q2, s2, b2)
    x2 = jax.random.normal(k_x, (2, 5, k2), jnp.float32).astype(jnp.bfloat16)
    out2 = jax.block_until_ready(quantized_linear(x2, params2))
    ref2 = _reference(x2, q2, s2, b2)
    assert out2.shape == (2, 5, n2)
    assert jnp.allclose(out2.astype(jnp.float32), ref2, atol=1.0, rtol=2e-2)

    print("KERNEL_OK")
</pallas_src>

<mosaic_0001>
module attributes {stable_mosaic.version = 11 : i64} {
  func.func @_w8a16_kernel(%arg0: i32, %arg1: i32, %arg2: i32, %arg3: memref<256x256xbf16, #tpu.memory_space<vmem>>, %arg4: memref<256x512xi8, #tpu.memory_space<vmem>>, %arg5: memref<1x512xf32, #tpu.memory_space<vmem>>, %arg6: memref<1x512xf32, #tpu.memory_space<vmem>>, %arg7: memref<256x512xbf16, #tpu.memory_space<vmem>>, %arg8: memref<256x512xf32, #tpu.memory_space<vmem>>) attributes {dimension_semantics = [#tpu.dimension_semantics<parallel>, #tpu.dimension_semantics<parallel>, #tpu.dimension_semantics<arbitrary>], iteration_bounds = array<i64: 1, 1, 1>, scalar_prefetch = 0 : i64, scratch_operands = 1 : i64, tpu.core_type = #tpu.core_type<tc>, window_params = [{transform_indices = @transform_0, window_bounds = array<i64: 256, 256>}, {transform_indices = @transform_1, window_bounds = array<i64: 256, 512>}, {transform_indices = @transform_2, window_bounds = array<i64: 1, 512>}, {transform_indices = @transform_3, window_bounds = array<i64: 1, 512>}, {transform_indices = @transform_4, window_bounds = array<i64: 256, 512>}]} {
    %c0_i32 = arith.constant 0 : i32
    %0 = arith.cmpi eq, %arg2, %c0_i32 : i32
    %1 = arith.extui %0 : i1 to i32
    %c0_i32_0 = arith.constant 0 : i32
    %2 = arith.cmpi ne, %1, %c0_i32_0 : i32
    scf.if %2 {
      %cst_10 = arith.constant 0.000000e+00 : f32
      %13 = vector.broadcast %cst_10 : f32 to vector<256x512xf32>
      %c0_11 = arith.constant 0 : index
      %c0_12 = arith.constant 0 : index
      %14 = vector.load %arg8[%c0_11, %c0_12] : memref<256x512xf32, #tpu.memory_space<vmem>>, vector<256x512xf32>
      tpu.vector_store %arg8[%c0_11, %c0_12], %13 {strides = array<i32>} : memref<256x512xf32, #tpu.memory_space<vmem>>, vector<256x512xf32>,
    } else {
    }
    %c0 = arith.constant 0 : index
    %c0_1 = arith.constant 0 : index
    %3 = vector.load %arg8[%c0, %c0_1] : memref<256x512xf32, #tpu.memory_space<vmem>>, vector<256x512xf32>
    %c0_2 = arith.constant 0 : index
    %c0_3 = arith.constant 0 : index
    %4 = vector.load %arg3[%c0_2, %c0_3] : memref<256x256xbf16, #tpu.memory_space<vmem>>, vector<256x256xbf16>
    %c0_4 = arith.constant 0 : index
    %c0_5 = arith.constant 0 : index
    %5 = vector.load %arg4[%c0_4, %c0_5] : memref<256x512xi8, #tpu.memory_space<vmem>>, vector<256x512xi8>
    %6 = arith.sitofp %5 : vector<256x512xi8> to vector<256x512xbf16>
    %cst = arith.constant dense<0.000000e+00> : vector<256x512xf32>
    %7 = tpu.matmul %4, %6, %cst {dimension_numbers = #tpu.dot_dimension_numbers<[1], [0], [0], [1], [0, 0, 1, 1], [], []>} : vector<256x256xbf16>, vector<256x512xbf16>, vector<256x512xf32> -> vector<256x512xf32>
    %8 = arith.addf %3, %7 : vector<256x512xf32>
    %c0_6 = arith.constant 0 : index
    %c0_7 = arith.constant 0 : index
    %9 = vector.load %arg8[%c0_6, %c0_7] : memref<256x512xf32, #tpu.memory_space<vmem>>, vector<256x512xf32>
    tpu.vector_store %arg8[%c0_6, %c0_7], %8 {strides = array<i32>} : memref<256x512xf32, #tpu.memory_space<vmem>>, vector<256x512xf32>,
    %c0_i32_8 = arith.constant 0 : i32
    %10 = arith.cmpi eq, %arg2, %c0_i32_8 : i32
    %11 = arith.extui %10 : i1 to i32
    %c0_i32_9 = arith.constant 0 : i32
    %12 = arith.cmpi ne, %11, %c0_i32_9 : i32
    scf.if %12 {
      %c0_10 = arith.constant 0 : index
      %c0_11 = arith.constant 0 : index
      %13 = vector.load %arg8[%c0_10, %c0_11] : memref<256x512xf32, #tpu.memory_space<vmem>>, vector<256x512xf32>
      %c0_12 = arith.constant 0 : index
      %c0_13 = arith.constant 0 : index
      %14 = vector.load %arg5[%c0_12, %c0_13] : memref<1x512xf32, #tpu.memory_space<vmem>>, vector<1x512xf32>
      %15 = vector.broadcast %14 : vector<1x512xf32> to vector<256x512xf32>
      %16 = arith.mulf %13, %15 : vector<256x512xf32>
      %c0_14 = arith.constant 0 : index
      %c0_15 = arith.constant 0 : index
      %17 = vector.load %arg6[%c0_14, %c0_15] : memref<1x512xf32, #tpu.memory_space<vmem>>, vector<1x512xf32>
      %18 = vector.broadcast %17 : vector<1x512xf32> to vector<256x512xf32>
      %19 = arith.addf %16, %18 : vector<256x512xf32>
      %20 = arith.truncf %19 : vector<256x512xf32> to vector<256x512xbf16>
      %c0_16 = arith.constant 0 : index
      %c0_17 = arith.constant 0 : index
      %21 = vector.load %arg7[%c0_16, %c0_17] : memref<256x512xbf16, #tpu.memory_space<vmem>>, vector<256x512xbf16>
      tpu.vector_store %arg7[%c0_16, %c0_17], %20 {strides = array<i32>} : memref<256x512xbf16, #tpu.memory_space<vmem>>, vector<256x512xbf16>,
    } else {
    }
    return
  }
  func.func @transform_0(%arg0: i32, %arg1: i32, %arg2: i32) -> (i32, i32) {
    %c0_i32 = arith.constant 0 : i32
    return %arg1, %arg2 : i32, i32
  }
  func.func @transform_1(%arg0: i32, %arg1: i32, %arg2: i32) -> (i32, i32) {
    %c0_i32 = arith.constant 0 : i32
    return %arg2, %arg0 : i32, i32
  }
  func.func @transform_2(%arg0: i32, %arg1: i32, %arg2: i32) -> (i32, i32) {
    %c0_i32 = arith.constant 0 : i32
    %c0_i32_0 = arith.constant 0 : i32
    return %c0_i32, %arg0 : i32, i32
  }
  func.func @transform_3(%arg0: i32, %arg1: i32, %arg2: i32) -> (i32, i32) {
    %c0_i32 = arith.constant 0 : i32
    %c0_i32_0 = arith.constant 0 : i32
    return %c0_i32, %arg0 : i32, i32
  }
  func.func @transform_4(%arg0: i32, %arg1: i32, %arg2: i32) -> (i32, i32) {
    %c0_i32 = arith.constant 0 : i32
    return %arg1, %arg0 : i32, i32
  }
}

</mosaic_0001>

<bundles_post_ra>
// kernel: tpu_custom_call.1
= control target key start
LH: loop header
LB: loop body
LE: loop exit
PB: predicated region body
PF: predicated region fallthrough
CT: control target
= control target key end

     0   :  { %9 = vsyncpa [#allocation4], 0  ;;  %s2770_s0 = inlined_call_operand.hbm [shape: bf16[256,256], index: 0, kind: input, shape index: {}]   ;;  %s2771_s1 = inlined_call_operand.hbm [shape: s8[256,512], index: 1, kind: input, shape index: {}]   ;;  %s2772_s2 = inlined_call_operand.vmem [shape: f32[1,512], index: 2, kind: input, shape index: {}]   ;;  %s2773_s3 = inlined_call_operand.vmem [shape: f32[1,512], index: 3, kind: input, shape index: {}]   ;;  %s2774_s4 = inlined_call_operand.hbm [shape: bf16[256,512], index: 4, kind: output, shape index: {}]  }
   0x1   :  { %10 = vsyncpa [#allocation7], 0 }
   0x2   :  { %11 = vsyncpa [#allocation5], 0  ;;  %s2422_s15 = smov [#allocation3]   ;;  %s2350_s19 = scalar_lea.hbm %s2770_s0, 4096 }
   0x3   :  { %s17_s16 = sshll.u32 %s2422_s15, 4  ;;  %p2351_p0 = scmp.ne.s32.totalorder %s2770_s0, %s2350_s19  ;;  %s18_s16 = int_to_ptr.vmem [resolvable:$true] %s17_s16 }
   0x4   :  { %p2354_p1 = scmp.lt.u32.totalorder %s2350_s19, %s2770_s0 }
   0x6   :  { %p2356_p2 = pnand %p2354_p1, %p2351_p0 }
   0x8   :  { %2359 = shalt.err (!%p2356_p2)
}
   0x9   :  { %s2360_s24 = scalar_lea.vmem %s18_s16, 4096  ;;  %p2365_p4 = scmp.lt.s32.totalorder %s18_s16, %s18_s16 }
   0xa   :  { %p2361_p3 = scmp.ne.s32.totalorder %s18_s16, %s2360_s24  ;;  %p2366_p5 = scmp.lt.s32.totalorder %s2360_s24, %s2360_s24 }
   0xc   :  { %p2367_p6 = por %p2366_p5, %p2365_p4 }
   0xe   :  { %p2368_p7 = pnand %p2367_p6, %p2361_p3 }
  0x10   :  { %2371 = shalt.err (!%p2368_p7)
}
  0x11   :  { %s2423_s25 = smov 128   ;;  %s2424_s26 = smov 8  }
  0x12   :  { %23 = dma.hbm_to_vmem [thread:$0]  %s2770_s0, 4096, %s18_s16, [#allocation4], %s2423_s25, %s2423_s25, %s2424_s26  }
  0x13   :  { %s2425_s29 = smov [#allocation6]   ;;  %s2372_s7 = scalar_lea.hbm %s2771_s1, 4096 }
  0x14   :  { %s29_s30 = sshll.u32 %s2425_s29, 4  ;;  %p2373_p8 = scmp.ne.s32.totalorder %s2771_s1, %s2372_s7  ;;  %s30_s30 = int_to_ptr.vmem [resolvable:$true] %s29_s30 }
  0x15   :  { %p2376_p9 = scmp.lt.u32.totalorder %s2372_s7, %s2771_s1 }
  0x17   :  { %p2378_p10 = pnand %p2376_p9, %p2373_p8 }
  0x19   :  { %2381 = shalt.err (!%p2378_p10)
}
  0x1a   :  { %s2382_s12 = scalar_lea.vmem %s30_s30, 4096  ;;  %p2387_p12 = scmp.lt.s32.totalorder %s30_s30, %s30_s30 }
  0x1b   :  { %p2383_p11 = scmp.ne.s32.totalorder %s30_s30, %s2382_s12  ;;  %p2388_p13 = scmp.lt.s32.totalorder %s2382_s12, %s2382_s12 }
  0x1d   :  { %p2389_p0 = por %p2388_p13, %p2387_p12 }
  0x1f   :  { %p2390_p1 = pnand %p2389_p0, %p2383_p11 }
  0x21   :  { %2393 = shalt.err (!%p2390_p1)
}
  0x22   :  { %s2426_s0 = smov 512   ;;  %s2427_s13 = smov 32  }
  0x23   :  { %35 = dma.hbm_to_vmem [thread:$0]  %s2771_s1, 4096, %s30_s30, [#allocation7], %s2426_s0, %s2426_s0, %s2427_s13  }
  0x24   :  { %2416 = dma.done.wait [#allocation4], 4096  }
  0x25   :  { %2417 = vsyncadd [#allocation4], 4294963200 }
  0x26   :  { %2418 = dma.done.wait [#allocation7], 4096  }
  0x27   :  { %2419 = vsyncadd [#allocation7], 4294963200  ;;  %v339_v0 = vld [vmem:[#allocation6 + $0x8] sm:$0xff]  ;;  %v341_v1 = vld [vmem:[#allocation6 + $0x18] sm:$0xff] }
  0x28   :  { %v338_v2 = vld [vmem:[#allocation6] sm:$0xff]  ;;  %v371_v3 = vunpack.c.l.s8.bf16 %v339_v0  ;;  %v375_v4 = vunpack.c.h.s8.bf16 %v339_v0  ;;  %v373_v5 = vunpack.c.l.s8.bf16 %v341_v1  ;;  %v377_v6 = vunpack.c.h.s8.bf16 %v341_v1  ;;  %v340_v7 = vld [vmem:[#allocation6 + $0x10] sm:$0xff]  ;;  %v343_v10 = vld [vmem:[#allocation6 + $0x28] sm:$0xff] }
  0x29   :  { %v370_v8 = vunpack.c.l.s8.bf16 %v338_v2  ;;  %v372_v9 = vunpack.c.l.s8.bf16 %v340_v7  ;;  %v345_v11 = vld [vmem:[#allocation6 + $0x38] sm:$0xff]  ;;  %v374_v12 = vunpack.c.h.s8.bf16 %v338_v2  ;;  %v376_v13 = vunpack.c.h.s8.bf16 %v340_v7  ;;  %v342_v16 = vld [vmem:[#allocation6 + $0x20] sm:$0xff]  ;;  %v344_v17 = vld [vmem:[#allocation6 + $0x30] sm:$0xff] }
  0x2a   :  { %594 = vmatprep.subr.bf16.mxu0 %v371_v3  ;;  %787 = vmatprep.subr.bf16.mxu1 %v373_v5  ;;  %v379_v14 = vunpack.c.l.s8.bf16 %v343_v10  ;;  %v381_v15 = vunpack.c.l.s8.bf16 %v345_v11  ;;  %v378_v18 = vunpack.c.l.s8.bf16 %v342_v16  ;;  %v380_v19 = vunpack.c.l.s8.bf16 %v344_v17  ;;  %v347_v22 = vld [vmem:[#allocation6 + $0x48] sm:$0xff]  ;;  %v349_v23 = vld [vmem:[#allocation6 + $0x58] sm:$0xff]  ;;  %v346_v27 = vld [vmem:[#allocation6 + $0x40] sm:$0xff] }
  0x2b   :  { %595 = vmatpush1.bf16.msra.mxu0 %v370_v8  ;;  %788 = vmatpush1.bf16.msra.mxu1 %v372_v9  ;;  %v383_v20 = vunpack.c.h.s8.bf16 %v343_v10  ;;  %v385_v21 = vunpack.c.h.s8.bf16 %v345_v11  ;;  %v2304_v24 = vld [vmem:[#allocation3 + $0x4] ss:$8 sps:$4 sm:$0xff]   ;;  %v382_v25 = vunpack.c.h.s8.bf16 %v342_v16  ;;  %v384_v26 = vunpack.c.h.s8.bf16 %v344_v17  ;;  %v348_v30 = vld [vmem:[#allocation6 + $0x50] sm:$0xff]  ;;  %v353_v36 = vld [vmem:[#allocation6 + $0x78] sm:$0xff] }
  0x2c   :  { %596 = vmatprep.subr.bf16.mxu0 %v375_v4  ;;  %789 = vmatprep.subr.bf16.mxu1 %v377_v6  ;;  %v387_v28 = vunpack.c.l.s8.bf16 %v347_v22  ;;  %v389_v29 = vunpack.c.l.s8.bf16 %v349_v23  ;;  %v386_v31 = vunpack.c.l.s8.bf16 %v346_v27  ;;  %v388_v32 = vunpack.c.l.s8.bf16 %v348_v30  ;;  %v351_v35 = vld [vmem:[#allocation6 + $0x68] sm:$0xff]  ;;  %v350_v39 = vld [vmem:[#allocation6 + $0x60] sm:$0xff]  ;;  %v352_v42 = vld [vmem:[#allocation6 + $0x70] sm:$0xff] }
  0x2d   :  { %626 = vmatprep.mubr.bf16.mxu0 %v2304_v24  ;;  %819 = vmatprep.mubr.bf16.mxu1 %v2304_v24  ;;  %v391_v33 = vunpack.c.h.s8.bf16 %v347_v22  ;;  %v393_v34 = vunpack.c.h.s8.bf16 %v349_v23  ;;  %v390_v37 = vunpack.c.h.s8.bf16 %v346_v27  ;;  %v392_v38 = vunpack.c.h.s8.bf16 %v348_v30  ;;  %v355_v47 = vld [vmem:[#allocation6 + $0x88] sm:$0xff]  ;;  %v357_v48 = vld [vmem:[#allocation6 + $0x98] sm:$0xff]  ;;  %v354_v49 = vld [vmem:[#allocation6 + $0x80] sm:$0xff] }
  0x2e   :  { %v395_v40 = vunpack.c.l.s8.bf16 %v351_v35  ;;  %v397_v41 = vunpack.c.l.s8.bf16 %v353_v36  ;;  %v394_v43 = vunpack.c.l.s8.bf16 %v350_v39  ;;  %v396_v44 = vunpack.c.l.s8.bf16 %v352_v42  ;;  %v356_v52 = vld [vmem:[#allocation6 + $0x90] sm:$0xff]  ;;  %v359_v59 = vld [vmem:[#allocation6 + $0xa8] sm:$0xff]  ;;  %v361_v60 = vld [vmem:[#allocation6 + $0xb8] sm:$0xff] }
  0x2f   :  { %597 = vmatpush1.bf16.msra.mxu0 %v374_v12  ;;  %790 = vmatpush1.bf16.msra.mxu1 %v376_v13  ;;  %v399_v45 = vunpack.c.h.s8.bf16 %v351_v35  ;;  %v401_v46 = vunpack.c.h.s8.bf16 %v353_v36  ;;  %v398_v50 = vunpack.c.h.s8.bf16 %v350_v39  ;;  %v400_v51 = vunpack.c.h.s8.bf16 %v352_v42  ;;  %v358_v1 = vld [vmem:[#allocation6 + $0xa0] sm:$0xff]  ;;  %v360_v2 = vld [vmem:[#allocation6 + $0xb0] sm:$0xff]  ;;  %v363_v7 = vld [vmem:[#allocation6 + $0xc8] sm:$0xff] }
  0x30   :  { %598 = vmatprep.subr.bf16.mxu0 %v379_v14  ;;  %791 = vmatprep.subr.bf16.mxu1 %v381_v15  ;;  %v403_v53 = vunpack.c.l.s8.bf16 %v355_v47  ;;  %v405_v54 = vunpack.c.l.s8.bf16 %v357_v48  ;;  %v402_v55 = vunpack.c.l.s8.bf16 %v354_v49  ;;  %v404_v56 = vunpack.c.l.s8.bf16 %v356_v52  ;;  %v365_v8 = vld [vmem:[#allocation6 + $0xd8] sm:$0xff]  ;;  %v362_v13 = vld [vmem:[#allocation6 + $0xc0] sm:$0xff]  ;;  %v364_v14 = vld [vmem:[#allocation6 + $0xd0] sm:$0xff] }
  0x31   :  { %v407_v57 = vunpack.c.h.s8.bf16 %v355_v47  ;;  %v409_v58 = vunpack.c.h.s8.bf16 %v357_v48  ;;  %v406_v61 = vunpack.c.h.s8.bf16 %v354_v49  ;;  %v408_v62 = vunpack.c.h.s8.bf16 %v356_v52  ;;  %v2307_v35 = vld [vmem:[#allocation3 + $0x10] ss:$8 sps:$4 sm:$0xff]   ;;  %v2308_v36 = vld [vmem:[#allocation3 + $0x24] ss:$8 sps:$4 sm:$0xff]   ;;  %v2317_v42 = vld [vmem:[#allocation3 + $0x54] ss:$8 sps:$4 sm:$0xff]  }
  0x32   :  { %v411_v63 = vunpack.c.l.s8.bf16 %v359_v59  ;;  %v413_v0 = vunpack.c.l.s8.bf16 %v361_v60  ;;  %v410_v3 = vunpack.c.l.s8.bf16 %v358_v1  ;;  %v412_v4 = vunpack.c.l.s8.bf16 %v360_v2  ;;  %v2313_v39 = vld [vmem:[#allocation3 + $0x30] ss:$8 sps:$4 sm:$0xff]   ;;  %v2326_v48 = vld [vmem:[#allocation3 + $0x84] ss:$8 sps:$4 sm:$0xff]   ;;  %v2328_v49 = vld [vmem:[#allocation3 + $0x80] ss:$8 sps:$4 sm:$0xff]  }
  0x33   :  { %599 = vmatpush1.bf16.msra.mxu0 %v378_v18  ;;  %792 = vmatpush1.bf16.msra.mxu1 %v380_v19  ;;  %v415_v5 = vunpack.c.h.s8.bf16 %v359_v59  ;;  %v417_v6 = vunpack.c.h.s8.bf16 %v361_v60  ;;  %v414_v9 = vunpack.c.h.s8.bf16 %v358_v1  ;;  %v416_v10 = vunpack.c.h.s8.bf16 %v360_v2  ;;  %v367_v19 = vld [vmem:[#allocation6 + $0xe8] sm:$0xff]  ;;  %v2325_v47 = vld [vmem:[#allocation3 + $0x70] ss:$8 sps:$4 sm:$0xff]  }
  0x34   :  { %600 = vmatprep.subr.bf16.mxu0 %v383_v20  ;;  %793 = vmatprep.subr.bf16.mxu1 %v385_v21  ;;  %v419_v11 = vunpack.c.l.s8.bf16 %v363_v7  ;;  %v421_v12 = vunpack.c.l.s8.bf16 %v365_v8  ;;  %v418_v15 = vunpack.c.l.s8.bf16 %v362_v13  ;;  %v420_v16 = vunpack.c.l.s8.bf16 %v364_v14  ;;  %v369_v20 = vld [vmem:[#allocation6 + $0xf8] sm:$0xff]  ;;  %v2332_v52 = vld [vmem:[#allocation3 + $0xa4] ss:$8 sps:$4 sm:$0xff]  }
  0x35   :  { %v423_v17 = vunpack.c.h.s8.bf16 %v363_v7  ;;  %v425_v18 = vunpack.c.h.s8.bf16 %v365_v8  ;;  %v422_v21 = vunpack.c.h.s8.bf16 %v362_v13  ;;  %v424_v22 = vunpack.c.h.s8.bf16 %v364_v14  ;;  %v2343_v59 = vld [vmem:[#allocation3 + $0xd0] ss:$8 sps:$4 sm:$0xff]   ;;  %v2344_v60 = vld [vmem:[#allocation3 + $0xe4] ss:$8 sps:$4 sm:$0xff]   ;;  %v1517_v7 = vld [vmem:[%s2773_s3] sm:$0xf] }
  0x36   :  { %v427_v23 = vunpack.c.l.s8.bf16 %v367_v19  ;;  %v429_v24 = vunpack.c.l.s8.bf16 %v369_v20  ;;  %v433_v30 = vunpack.c.h.s8.bf16 %v369_v20 }
  0x37   :  { %601 = vmatpush1.bf16.msra.mxu0 %v382_v25  ;;  %794 = vmatpush1.bf16.msra.mxu1 %v384_v26  ;;  %v366_v25 = vld [vmem:[#allocation6 + $0xe0] sm:$0xff]  ;;  %v368_v26 = vld [vmem:[#allocation6 + $0xf0] sm:$0xff] }
  0x38   :  { %602 = vmatprep.subr.bf16.mxu0 %v387_v28  ;;  %795 = vmatprep.subr.bf16.mxu1 %v389_v29  ;;  %v426_v27 = vunpack.c.l.s8.bf16 %v366_v25  ;;  %v428_v28 = vunpack.c.l.s8.bf16 %v368_v26  ;;  %v431_v29 = vunpack.c.h.s8.bf16 %v367_v19 }
  0x3b   :  { %603 = vmatpush1.bf16.msra.mxu0 %v386_v31  ;;  %796 = vmatpush1.bf16.msra.mxu1 %v388_v32  ;;  %v430_v31 = vunpack.c.h.s8.bf16 %v366_v25  ;;  %v432_v32 = vunpack.c.h.s8.bf16 %v368_v26 }
  0x3c   :  { %604 = vmatprep.subr.bf16.mxu0 %v391_v33  ;;  %797 = vmatprep.subr.bf16.mxu1 %v393_v34  ;;  %v2302_v33 = vld [vmem:[#allocation3] ss:$8 sps:$4 sm:$0xff]   ;;  %v2305_v34 = vld [vmem:[#allocation3 + $0x14] ss:$8 sps:$4 sm:$0xff]  }
  0x3f   :  { %605 = vmatpush1.bf16.msra.mxu0 %v390_v37  ;;  %798 = vmatpush1.bf16.msra.mxu1 %v392_v38  ;;  %v2310_v37 = vld [vmem:[#allocation3 + $0x20] ss:$8 sps:$4 sm:$0xff]   ;;  %v2311_v38 = vld [vmem:[#allocation3 + $0x34] ss:$8 sps:$4 sm:$0xff]  }
  0x40   :  { %606 = vmatprep.subr.bf16.mxu0 %v395_v40  ;;  %799 = vmatprep.subr.bf16.mxu1 %v397_v41  ;;  %v2314_v40 = vld [vmem:[#allocation3 + $0x44] ss:$8 sps:$4 sm:$0xff]   ;;  %v2316_v41 = vld [vmem:[#allocation3 + $0x40] ss:$8 sps:$4 sm:$0xff]  }
  0x43   :  { %607 = vmatpush1.bf16.msra.mxu0 %v394_v43  ;;  %800 = vmatpush1.bf16.msra.mxu1 %v396_v44  ;;  %v2319_v43 = vld [vmem:[#allocation3 + $0x50] ss:$8 sps:$4 sm:$0xff]   ;;  %v2320_v44 = vld [vmem:[#allocation3 + $0x64] ss:$8 sps:$4 sm:$0xff]  }
  0x44   :  { %608 = vmatprep.subr.bf16.mxu0 %v399_v45  ;;  %801 = vmatprep.subr.bf16.mxu1 %v401_v46  ;;  %v2322_v45 = vld [vmem:[#allocation3 + $0x60] ss:$8 sps:$4 sm:$0xff]   ;;  %v2323_v46 = vld [vmem:[#allocation3 + $0x74] ss:$8 sps:$4 sm:$0xff]  }
  0x47   :  { %609 = vmatpush1.bf16.msra.mxu0 %v398_v50  ;;  %802 = vmatpush1.bf16.msra.mxu1 %v400_v51  ;;  %v2329_v50 = vld [vmem:[#allocation3 + $0x94] ss:$8 sps:$4 sm:$0xff]   ;;  %v2331_v51 = vld [vmem:[#allocation3 + $0x90] ss:$8 sps:$4 sm:$0xff]  }
  0x48   :  { %610 = vmatprep.subr.bf16.mxu0 %v403_v53  ;;  %803 = vmatprep.subr.bf16.mxu1 %v405_v54  ;;  %v2334_v53 = vld [vmem:[#allocation3 + $0xa0] ss:$8 sps:$4 sm:$0xff]   ;;  %v2335_v54 = vld [vmem:[#allocation3 + $0xb4] ss:$8 sps:$4 sm:$0xff]  }
  0x4b   :  { %611 = vmatpush1.bf16.msra.mxu0 %v402_v55  ;;  %804 = vmatpush1.bf16.msra.mxu1 %v404_v56  ;;  %v2337_v55 = vld [vmem:[#allocation3 + $0xb0] ss:$8 sps:$4 sm:$0xff]   ;;  %v2338_v56 = vld [vmem:[#allocation3 + $0xc4] ss:$8 sps:$4 sm:$0xff]  }
  0x4c   :  { %612 = vmatprep.subr.bf16.mxu0 %v407_v57  ;;  %805 = vmatprep.subr.bf16.mxu1 %v409_v58  ;;  %v2340_v57 = vld [vmem:[#allocation3 + $0xc0] ss:$8 sps:$4 sm:$0xff]   ;;  %v2341_v58 = vld [vmem:[#allocation3 + $0xd4] ss:$8 sps:$4 sm:$0xff]  }
  0x4f   :  { %613 = vmatpush1.bf16.msra.mxu0 %v406_v61  ;;  %806 = vmatpush1.bf16.msra.mxu1 %v408_v62  ;;  %v2346_v61 = vld [vmem:[#allocation3 + $0xe0] ss:$8 sps:$4 sm:$0xff]   ;;  %v2347_v62 = vld [vmem:[#allocation3 + $0xf4] ss:$8 sps:$4 sm:$0xff]  }
  0x50   :  { %614 = vmatprep.subr.bf16.mxu0 %v411_v63  ;;  %807 = vmatprep.subr.bf16.mxu1 %v413_v0  ;;  %v2349_v63 = vld [vmem:[#allocation3 + $0xf0] ss:$8 sps:$4 sm:$0xff]   ;;  %v1369_v0 = vlaneseq }
  0x52   :  { %v1370_v1 = vshrl.u32 %v1369_v0, 7 }
  0x53   :  { %615 = vmatpush1.bf16.msra.mxu0 %v410_v3  ;;  %808 = vmatpush1.bf16.msra.mxu1 %v412_v4  ;;  %v1367_v4 = vld [vmem:[%s2772_s2] sm:$0xf]  ;;  %s2428_s2 = smov [#allocation8]  }
  0x54   :  { %616 = vmatprep.subr.bf16.mxu0 %v415_v5  ;;  %809 = vmatprep.subr.bf16.mxu1 %v417_v6  ;;  %v1371_v2 = vsub.s32 0, %v1370_v1  ;;  %v1379_v3 = vsub.s32 2, %v1370_v1  ;;  %v1375_v5 = vsub.s32 1, %v1370_v1  ;;  %v1383_v6 = vsub.s32 3, %v1370_v1  ;;  %s2120_s3 = sshll.u32 %s2428_s2, 4  ;;  %s2121_s3 = int_to_ptr.vmem [resolvable:$true] %s2120_s3 }
  0x55   :  { %s2394_s19 = scalar_lea.vmem %s2121_s3, 8192  ;;  %p2399_p3 = scmp.lt.s32.totalorder %s2121_s3, %s2121_s3 }
  0x56   :  { %v2486_v8 = vrot.slane %v1367_v4, %v1371_v2  ;;  %v2496_v13 = vrot.slane %v1517_v7, %v1379_v3  ;;  %p2395_p2 = scmp.ne.s32.totalorder %s2121_s3, %s2394_s19  ;;  %p2400_p4 = scmp.lt.s32.totalorder %s2394_s19, %s2394_s19 }
  0x57   :  { %617 = vmatpush1.bf16.msra.mxu0 %v414_v9  ;;  %810 = vmatpush1.bf16.msra.mxu1 %v416_v10  ;;  %v2488_v9 = vrot.slane %v1367_v4, %v1379_v3  ;;  %v2490_v10 = vrot.slane %v1367_v4, %v1375_v5 }
  0x58   :  { %618 = vmatprep.subr.bf16.mxu0 %v419_v11  ;;  %811 = vmatprep.subr.bf16.mxu1 %v421_v12  ;;  %v2492_v11 = vrot.slane %v1367_v4, %v1383_v6  ;;  %v2494_v12 = vrot.slane %v1517_v7, %v1371_v2  ;;  %p2401_p5 = por %p2400_p4, %p2399_p3 }
  0x5a   :  { %p2402_p6 = pnand %p2401_p5, %p2395_p2 }
  0x5b   :  { %619 = vmatpush1.bf16.msra.mxu0 %v418_v15  ;;  %812 = vmatpush1.bf16.msra.mxu1 %v420_v16  ;;  %v2498_v16 = vrot.slane %v1517_v7, %v1375_v5 }
  0x5c   :  { %620 = vmatprep.subr.bf16.mxu0 %v423_v17  ;;  %813 = vmatprep.subr.bf16.mxu1 %v425_v18  ;;  %v2500_v17 = vrot.slane %v1517_v7, %v1383_v6 }
  0x5f   :  { %621 = vmatpush1.bf16.msra.mxu0 %v422_v21  ;;  %814 = vmatpush1.bf16.msra.mxu1 %v424_v22 }
  0x60   :  { %622 = vmatprep.subr.bf16.mxu0 %v427_v23  ;;  %815 = vmatprep.subr.bf16.mxu1 %v429_v24 }
  0x63   :  { %623 = vmatpush1.bf16.msra.mxu0 %v426_v27  ;;  %816 = vmatpush1.bf16.msra.mxu1 %v428_v28 }
  0x64   :  { %624 = vmatprep.subr.bf16.mxu0 %v431_v29  ;;  %817 = vmatprep.subr.bf16.mxu1 %v433_v30 }
  0x67   :  { %625 = vmatpush1.bf16.msra.mxu0 %v430_v31  ;;  %818 = vmatpush1.bf16.msra.mxu1 %v432_v32 }
  0x6a   :  { %627 = vmatmul.mubr.bf16.vlgmr.msra.gmra.mrb[0].mxu0 %v2302_v33  ;;  %820 = vmatmul.mubr.bf16.vlgmr.msra.gmra.mrb[0].mxu1 %v2302_v33 }
  0x6b   :  { %636 = vmatprep.mubr.bf16.mxu0 %v2305_v34  ;;  %829 = vmatprep.mubr.bf16.mxu1 %v2305_v34 }
  0x72   :  { %637 = vmatmul.mubr.bf16.gmra.mrb[4].mxu0 %v2307_v35  ;;  %830 = vmatmul.mubr.bf16.gmra.mrb[4].mxu1 %v2307_v35 }
  0x73   :  { %646 = vmatprep.mubr.bf16.mxu0 %v2308_v36  ;;  %839 = vmatprep.mubr.bf16.mxu1 %v2308_v36 }
  0x7a   :  { %647 = vmatmul.mubr.bf16.gmra.mrb[8].mxu0 %v2310_v37  ;;  %840 = vmatmul.mubr.bf16.gmra.mrb[8].mxu1 %v2310_v37 }
  0x7b   :  { %656 = vmatprep.mubr.bf16.mxu0 %v2311_v38  ;;  %849 = vmatprep.mubr.bf16.mxu1 %v2311_v38 }
  0x82   :  { %657 = vmatmul.mubr.bf16.gmra.mrb[12].mxu0 %v2313_v39  ;;  %850 = vmatmul.mubr.bf16.gmra.mrb[12].mxu1 %v2313_v39 }
  0x83   :  { %666 = vmatprep.mubr.bf16.mxu0 %v2314_v40  ;;  %859 = vmatprep.mubr.bf16.mxu1 %v2314_v40 }
  0x8a   :  { %667 = vmatmul.mubr.bf16.gmra.mrb[16].mxu0 %v2316_v41  ;;  %860 = vmatmul.mubr.bf16.gmra.mrb[16].mxu1 %v2316_v41 }
  0x8b   :  { %676 = vmatprep.mubr.bf16.mxu0 %v2317_v42  ;;  %869 = vmatprep.mubr.bf16.mxu1 %v2317_v42 }
  0x92   :  { %677 = vmatmul.mubr.bf16.gmra.mrb[20].mxu0 %v2319_v43  ;;  %870 = vmatmul.mubr.bf16.gmra.mrb[20].mxu1 %v2319_v43 }
  0x93   :  { %686 = vmatprep.mubr.bf16.mxu0 %v2320_v44  ;;  %879 = vmatprep.mubr.bf16.mxu1 %v2320_v44 }
  0x9a   :  { %687 = vmatmul.mubr.bf16.gmra.mrb[24].mxu0 %v2322_v45  ;;  %880 = vmatmul.mubr.bf16.gmra.mrb[24].mxu1 %v2322_v45 }
  0x9b   :  { %696 = vmatprep.mubr.bf16.mxu0 %v2323_v46  ;;  %889 = vmatprep.mubr.bf16.mxu1 %v2323_v46 }
  0xa2   :  { %697 = vmatmul.mubr.bf16.gmra.mrb[28].mxu0 %v2325_v47  ;;  %890 = vmatmul.mubr.bf16.gmra.mrb[28].mxu1 %v2325_v47 }
  0xa3   :  { %706 = vmatprep.mubr.bf16.mxu0 %v2326_v48  ;;  %899 = vmatprep.mubr.bf16.mxu1 %v2326_v48 }
  0xaa   :  { %707 = vmatmul.mubr.bf16.gmra.mrb[32].mxu0 %v2328_v49  ;;  %900 = vmatmul.mubr.bf16.gmra.mrb[32].mxu1 %v2328_v49 }
  0xab   :  { %716 = vmatprep.mubr.bf16.mxu0 %v2329_v50  ;;  %909 = vmatprep.mubr.bf16.mxu1 %v2329_v50 }
  0xb2   :  { %717 = vmatmul.mubr.bf16.gmra.mrb[36].mxu0 %v2331_v51  ;;  %910 = vmatmul.mubr.bf16.gmra.mrb[36].mxu1 %v2331_v51 }
  0xb3   :  { %726 = vmatprep.mubr.bf16.mxu0 %v2332_v52  ;;  %919 = vmatprep.mubr.bf16.mxu1 %v2332_v52 }
  0xba   :  { %727 = vmatmul.mubr.bf16.gmra.mrb[40].mxu0 %v2334_v53  ;;  %920 = vmatmul.mubr.bf16.gmra.mrb[40].mxu1 %v2334_v53 }
  0xbb   :  { %736 = vmatprep.mubr.bf16.mxu0 %v2335_v54  ;;  %929 = vmatprep.mubr.bf16.mxu1 %v2335_v54 }
  0xc2   :  { %737 = vmatmul.mubr.bf16.gmra.mrb[44].mxu0 %v2337_v55  ;;  %930 = vmatmul.mubr.bf16.gmra.mrb[44].mxu1 %v2337_v55 }
  0xc3   :  { %746 = vmatprep.mubr.bf16.mxu0 %v2338_v56  ;;  %939 = vmatprep.mubr.bf16.mxu1 %v2338_v56 }
  0xca   :  { %747 = vmatmul.mubr.bf16.gmra.mrb[48].mxu0 %v2340_v57  ;;  %940 = vmatmul.mubr.bf16.gmra.mrb[48].mxu1 %v2340_v57 }
  0xcb   :  { %756 = vmatprep.mubr.bf16.mxu0 %v2341_v58  ;;  %949 = vmatprep.mubr.bf16.mxu1 %v2341_v58 }
  0xd2   :  { %757 = vmatmul.mubr.bf16.gmra.mrb[52].mxu0 %v2343_v59  ;;  %950 = vmatmul.mubr.bf16.gmra.mrb[52].mxu1 %v2343_v59 }
  0xd3   :  { %766 = vmatprep.mubr.bf16.mxu0 %v2344_v60  ;;  %959 = vmatprep.mubr.bf16.mxu1 %v2344_v60 }
  0xda   :  { %767 = vmatmul.mubr.bf16.gmra.mrb[56].mxu0 %v2346_v61  ;;  %960 = vmatmul.mubr.bf16.gmra.mrb[56].mxu1 %v2346_v61 }
  0xdb   :  { %776 = vmatprep.mubr.bf16.mxu0 %v2347_v62  ;;  %969 = vmatprep.mubr.bf16.mxu1 %v2347_v62 }
  0xe2   :  { %777 = vmatmul.mubr.bf16.gmra.mrb[60].mxu0 %v2349_v63  ;;  %970 = vmatmul.mubr.bf16.gmra.mrb[60].mxu1 %v2349_v63 }
 0x13d   :  { %v628_v14 = vpop.f32.mrb[0].mxu0  ;;  %v821_v15 = vpop.f32.mrb[0].mxu1 }
 0x13e   :  { %v1389_v18 = vmul.f32 %v2486_v8, %v628_v14  ;;  %v1391_v19 = vmul.f32 %v2488_v9, %v821_v15  ;;  %v630_v20 = vpop.f32.mrb[1].mxu0  ;;  %v823_v21 = vpop.f32.mrb[1].mxu1 }
 0x13f   :  { %v1390_v22 = vmul.f32 %v2490_v10, %v630_v20  ;;  %v1392_v23 = vmul.f32 %v2492_v11, %v823_v21  ;;  %v632_v24 = vpop.f32.mrb[2].mxu0  ;;  %v825_v25 = vpop.f32.mrb[2].mxu1 }
 0x140   :  { %v1539_v26 = vadd.f32 %v2494_v12, %v1389_v18  ;;  %v1541_v27 = vadd.f32 %v2496_v13, %v1391_v19  ;;  %v1393_v28 = vmul.f32 %v2486_v8, %v632_v24  ;;  %v1395_v29 = vmul.f32 %v2488_v9, %v825_v25  ;;  %v634_v30 = vpop.f32.mrb[3].mxu0  ;;  %v827_v31 = vpop.f32.mrb[3].mxu1 }
 0x141   :  { %v1540_v32 = vadd.f32 %v2498_v16, %v1390_v22  ;;  %v1542_v33 = vadd.f32 %v2500_v17, %v1392_v23  ;;  %v1394_v34 = vmul.f32 %v2490_v10, %v634_v30  ;;  %v1396_v35 = vmul.f32 %v2492_v11, %v827_v31 }
 0x142   :  { %v1543_v36 = vadd.f32 %v2494_v12, %v1393_v28  ;;  %v1545_v37 = vadd.f32 %v2496_v13, %v1395_v29 }
 0x143   :  { %v2229_v38 = vpack.c.bf16 %v1540_v32, %v1539_v26  ;;  %v2230_v39 = vpack.c.bf16 %v1542_v33, %v1541_v27  ;;  %v1544_v40 = vadd.f32 %v2498_v16, %v1394_v34  ;;  %v1546_v41 = vadd.f32 %v2500_v17, %v1396_v35 }
 0x145   :  { %2051 = vst [vmem:[#allocation8] sm:$0xff] %v2229_v38  ;;  %2052 = vst [vmem:[#allocation8 + $0x8] sm:$0xff] %v2230_v39  ;;  %v2231_v42 = vpack.c.bf16 %v1544_v40, %v1543_v36  ;;  %v2232_v43 = vpack.c.bf16 %v1546_v41, %v1545_v37  ;;  %v638_v44 = vpop.f32.mrb[4].mxu0  ;;  %v831_v45 = vpop.f32.mrb[4].mxu1 }
 0x146   :  { %v1397_v46 = vmul.f32 %v2486_v8, %v638_v44  ;;  %v1399_v47 = vmul.f32 %v2488_v9, %v831_v45  ;;  %v640_v48 = vpop.f32.mrb[5].mxu0  ;;  %v833_v49 = vpop.f32.mrb[5].mxu1 }
 0x147   :  { %2053 = vst [vmem:[#allocation8 + $0x10] sm:$0xff] %v2231_v42  ;;  %2054 = vst [vmem:[#allocation8 + $0x18] sm:$0xff] %v2232_v43  ;;  %v1398_v50 = vmul.f32 %v2490_v10, %v640_v48  ;;  %v1400_v51 = vmul.f32 %v2492_v11, %v833_v49  ;;  %v642_v52 = vpop.f32.mrb[6].mxu0  ;;  %v835_v53 = vpop.f32.mrb[6].mxu1 }
 0x148   :  { %v1547_v54 = vadd.f32 %v2494_v12, %v1397_v46  ;;  %v1549_v55 = vadd.f32 %v2496_v13, %v1399_v47  ;;  %v1401_v56 = vmul.f32 %v2486_v8, %v642_v52  ;;  %v1403_v57 = vmul.f32 %v2488_v9, %v835_v53  ;;  %v644_v58 = vpop.f32.mrb[7].mxu0  ;;  %v837_v59 = vpop.f32.mrb[7].mxu1 }
 0x149   :  { %v1548_v60 = vadd.f32 %v2498_v16, %v1398_v50  ;;  %v1550_v61 = vadd.f32 %v2500_v17, %v1400_v51  ;;  %v1402_v62 = vmul.f32 %v2490_v10, %v644_v58  ;;  %v1404_v63 = vmul.f32 %v2492_v11, %v837_v59 }
 0x14a   :  { %v1551_v0 = vadd.f32 %v2494_v12, %v1401_v56  ;;  %v1553_v1 = vadd.f32 %v2496_v13, %v1403_v57 }
 0x14b   :  { %v2233_v2 = vpack.c.bf16 %v1548_v60, %v1547_v54  ;;  %v2234_v3 = vpack.c.bf16 %v1550_v61, %v1549_v55  ;;  %v1552_v4 = vadd.f32 %v2498_v16, %v1402_v62  ;;  %v1554_v5 = vadd.f32 %v2500_v17, %v1404_v63 }
 0x14d   :  { %2055 = vst [vmem:[#allocation8 + $0x20] sm:$0xff] %v2233_v2  ;;  %2056 = vst [vmem:[#allocation8 + $0x28] sm:$0xff] %v2234_v3  ;;  %v2235_v6 = vpack.c.bf16 %v1552_v4, %v1551_v0  ;;  %v2236_v7 = vpack.c.bf16 %v1554_v5, %v1553_v1  ;;  %v648_v14 = vpop.f32.mrb[8].mxu0  ;;  %v841_v15 = vpop.f32.mrb[8].mxu1 }
 0x14e   :  { %v1405_v18 = vmul.f32 %v2486_v8, %v648_v14  ;;  %v1407_v19 = vmul.f32 %v2488_v9, %v841_v15  ;;  %v650_v20 = vpop.f32.mrb[9].mxu0  ;;  %v843_v21 = vpop.f32.mrb[9].mxu1 }
 0x14f   :  { %2057 = vst [vmem:[#allocation8 + $0x30] sm:$0xff] %v2235_v6  ;;  %2058 = vst [vmem:[#allocation8 + $0x38] sm:$0xff] %v2236_v7  ;;  %v1406_v22 = vmul.f32 %v2490_v10, %v650_v20  ;;  %v1408_v23 = vmul.f32 %v2492_v11, %v843_v21  ;;  %v652_v24 = vpop.f32.mrb[10].mxu0  ;;  %v845_v25 = vpop.f32.mrb[10].mxu1 }
 0x150   :  { %v1555_v26 = vadd.f32 %v2494_v12, %v1405_v18  ;;  %v1557_v27 = vadd.f32 %v2496_v13, %v1407_v19  ;;  %v1409_v28 = vmul.f32 %v2486_v8, %v652_v24  ;;  %v1411_v29 = vmul.f32 %v2488_v9, %v845_v25  ;;  %v654_v30 = vpop.f32.mrb[11].mxu0  ;;  %v847_v31 = vpop.f32.mrb[11].mxu1 }
 0x151   :  { %v1556_v32 = vadd.f32 %v2498_v16, %v1406_v22  ;;  %v1558_v33 = vadd.f32 %v2500_v17, %v1408_v23  ;;  %v1410_v34 = vmul.f32 %v2490_v10, %v654_v30  ;;  %v1412_v35 = vmul.f32 %v2492_v11, %v847_v31 }
 0x152   :  { %v1559_v36 = vadd.f32 %v2494_v12, %v1409_v28  ;;  %v1561_v37 = vadd.f32 %v2496_v13, %v1411_v29 }
 0x153   :  { %v2237_v38 = vpack.c.bf16 %v1556_v32, %v1555_v26  ;;  %v2238_v39 = vpack.c.bf16 %v1558_v33, %v1557_v27  ;;  %v1560_v40 = vadd.f32 %v2498_v16, %v1410_v34  ;;  %v1562_v41 = vadd.f32 %v2500_v17, %v1412_v35 }
 0x155   :  { %2059 = vst [vmem:[#allocation8 + $0x40] sm:$0xff] %v2237_v38  ;;  %2060 = vst [vmem:[#allocation8 + $0x48] sm:$0xff] %v2238_v39  ;;  %v2239_v42 = vpack.c.bf16 %v1560_v40, %v1559_v36  ;;  %v2240_v43 = vpack.c.bf16 %v1562_v41, %v1561_v37  ;;  %v658_v44 = vpop.f32.mrb[12].mxu0  ;;  %v851_v45 = vpop.f32.mrb[12].mxu1 }
 0x156   :  { %v1413_v46 = vmul.f32 %v2486_v8, %v658_v44  ;;  %v1415_v47 = vmul.f32 %v2488_v9, %v851_v45  ;;  %v660_v48 = vpop.f32.mrb[13].mxu0  ;;  %v853_v49 = vpop.f32.mrb[13].mxu1 }
 0x157   :  { %2061 = vst [vmem:[#allocation8 + $0x50] sm:$0xff] %v2239_v42  ;;  %2062 = vst [vmem:[#allocation8 + $0x58] sm:$0xff] %v2240_v43  ;;  %v1414_v50 = vmul.f32 %v2490_v10, %v660_v48  ;;  %v1416_v51 = vmul.f32 %v2492_v11, %v853_v49  ;;  %v662_v52 = vpop.f32.mrb[14].mxu0  ;;  %v855_v53 = vpop.f32.mrb[14].mxu1 }
 0x158   :  { %v1563_v54 = vadd.f32 %v2494_v12, %v1413_v46  ;;  %v1565_v55 = vadd.f32 %v2496_v13, %v1415_v47  ;;  %v1417_v56 = vmul.f32 %v2486_v8, %v662_v52  ;;  %v1419_v57 = vmul.f32 %v2488_v9, %v855_v53  ;;  %v664_v58 = vpop.f32.mrb[15].mxu0  ;;  %v857_v59 = vpop.f32.mrb[15].mxu1 }
 0x159   :  { %v1564_v60 = vadd.f32 %v2498_v16, %v1414_v50  ;;  %v1566_v61 = vadd.f32 %v2500_v17, %v1416_v51  ;;  %v1418_v62 = vmul.f32 %v2490_v10, %v664_v58  ;;  %v1420_v63 = vmul.f32 %v2492_v11, %v857_v59 }
 0x15a   :  { %v1567_v0 = vadd.f32 %v2494_v12, %v1417_v56  ;;  %v1569_v1 = vadd.f32 %v2496_v13, %v1419_v57 }
 0x15b   :  { %v2241_v2 = vpack.c.bf16 %v1564_v60, %v1563_v54  ;;  %v2242_v3 = vpack.c.bf16 %v1566_v61, %v1565_v55  ;;  %v1568_v4 = vadd.f32 %v2498_v16, %v1418_v62  ;;  %v1570_v5 = vadd.f32 %v2500_v17, %v1420_v63 }
 0x15d   :  { %2063 = vst [vmem:[#allocation8 + $0x60] sm:$0xff] %v2241_v2  ;;  %2064 = vst [vmem:[#allocation8 + $0x68] sm:$0xff] %v2242_v3  ;;  %v2243_v6 = vpack.c.bf16 %v1568_v4, %v1567_v0  ;;  %v2244_v7 = vpack.c.bf16 %v1570_v5, %v1569_v1  ;;  %v668_v14 = vpop.f32.mrb[16].mxu0  ;;  %v861_v15 = vpop.f32.mrb[16].mxu1 }
 0x15e   :  { %v1421_v18 = vmul.f32 %v2486_v8, %v668_v14  ;;  %v1423_v19 = vmul.f32 %v2488_v9, %v861_v15  ;;  %v670_v20 = vpop.f32.mrb[17].mxu0  ;;  %v863_v21 = vpop.f32.mrb[17].mxu1 }
 0x15f   :  { %2065 = vst [vmem:[#allocation8 + $0x70] sm:$0xff] %v2243_v6  ;;  %2066 = vst [vmem:[#allocation8 + $0x78] sm:$0xff] %v2244_v7  ;;  %v1422_v22 = vmul.f32 %v2490_v10, %v670_v20  ;;  %v1424_v23 = vmul.f32 %v2492_v11, %v863_v21  ;;  %v672_v24 = vpop.f32.mrb[18].mxu0  ;;  %v865_v25 = vpop.f32.mrb[18].mxu1 }
 0x160   :  { %v1571_v26 = vadd.f32 %v2494_v12, %v1421_v18  ;;  %v1573_v27 = vadd.f32 %v2496_v13, %v1423_v19  ;;  %v1425_v28 = vmul.f32 %v2486_v8, %v672_v24  ;;  %v1427_v29 = vmul.f32 %v2488_v9, %v865_v25  ;;  %v674_v30 = vpop.f32.mrb[19].mxu0  ;;  %v867_v31 = vpop.f32.mrb[19].mxu1 }
 0x161   :  { %v1572_v32 = vadd.f32 %v2498_v16, %v1422_v22  ;;  %v1574_v33 = vadd.f32 %v2500_v17, %v1424_v23  ;;  %v1426_v34 = vmul.f32 %v2490_v10, %v674_v30  ;;  %v1428_v35 = vmul.f32 %v2492_v11, %v867_v31 }
 0x162   :  { %v1575_v36 = vadd.f32 %v2494_v12, %v1425_v28  ;;  %v1577_v37 = vadd.f32 %v2496_v13, %v1427_v29 }
 0x163   :  { %v2245_v38 = vpack.c.bf16 %v1572_v32, %v1571_v26  ;;  %v2246_v39 = vpack.c.bf16 %v1574_v33, %v1573_v27  ;;  %v1576_v40 = vadd.f32 %v2498_v16, %v1426_v34  ;;  %v1578_v41 = vadd.f32 %v2500_v17, %v1428_v35 }
 0x165   :  { %2067 = vst [vmem:[#allocation8 + $0x80] sm:$0xff] %v2245_v38  ;;  %2068 = vst [vmem:[#allocation8 + $0x88] sm:$0xff] %v2246_v39  ;;  %v2247_v42 = vpack.c.bf16 %v1576_v40, %v1575_v36  ;;  %v2248_v43 = vpack.c.bf16 %v1578_v41, %v1577_v37  ;;  %v678_v44 = vpop.f32.mrb[20].mxu0  ;;  %v871_v45 = vpop.f32.mrb[20].mxu1 }
 0x166   :  { %v1429_v46 = vmul.f32 %v2486_v8, %v678_v44  ;;  %v1431_v47 = vmul.f32 %v2488_v9, %v871_v45  ;;  %v680_v48 = vpop.f32.mrb[21].mxu0  ;;  %v873_v49 = vpop.f32.mrb[21].mxu1 }
 0x167   :  { %2069 = vst [vmem:[#allocation8 + $0x90] sm:$0xff] %v2247_v42  ;;  %2070 = vst [vmem:[#allocation8 + $0x98] sm:$0xff] %v2248_v43  ;;  %v1430_v50 = vmul.f32 %v2490_v10, %v680_v48  ;;  %v1432_v51 = vmul.f32 %v2492_v11, %v873_v49  ;;  %v682_v52 = vpop.f32.mrb[22].mxu0  ;;  %v875_v53 = vpop.f32.mrb[22].mxu1 }
 0x168   :  { %v1579_v54 = vadd.f32 %v2494_v12, %v1429_v46  ;;  %v1581_v55 = vadd.f32 %v2496_v13, %v1431_v47  ;;  %v1433_v56 = vmul.f32 %v2486_v8, %v682_v52  ;;  %v1435_v57 = vmul.f32 %v2488_v9, %v875_v53  ;;  %v684_v58 = vpop.f32.mrb[23].mxu0  ;;  %v877_v59 = vpop.f32.mrb[23].mxu1 }
 0x169   :  { %v1580_v60 = vadd.f32 %v2498_v16, %v1430_v50  ;;  %v1582_v61 = vadd.f32 %v2500_v17, %v1432_v51  ;;  %v1434_v62 = vmul.f32 %v2490_v10, %v684_v58  ;;  %v1436_v63 = vmul.f32 %v2492_v11, %v877_v59 }
 0x16a   :  { %v1583_v0 = vadd.f32 %v2494_v12, %v1433_v56  ;;  %v1585_v1 = vadd.f32 %v2496_v13, %v1435_v57 }
 0x16b   :  { %v2249_v2 = vpack.c.bf16 %v1580_v60, %v1579_v54  ;;  %v2250_v3 = vpack.c.bf16 %v1582_v61, %v1581_v55  ;;  %v1584_v4 = vadd.f32 %v2498_v16, %v1434_v62  ;;  %v1586_v5 = vadd.f32 %v2500_v17, %v1436_v63 }
 0x16d   :  { %2071 = vst [vmem:[#allocation8 + $0xa0] sm:$0xff] %v2249_v2  ;;  %2072 = vst [vmem:[#allocation8 + $0xa8] sm:$0xff] %v2250_v3  ;;  %v2251_v6 = vpack.c.bf16 %v1584_v4, %v1583_v0  ;;  %v2252_v7 = vpack.c.bf16 %v1586_v5, %v1585_v1  ;;  %v688_v14 = vpop.f32.mrb[24].mxu0  ;;  %v881_v15 = vpop.f32.mrb[24].mxu1 }
 0x16e   :  { %v1437_v18 = vmul.f32 %v2486_v8, %v688_v14  ;;  %v1439_v19 = vmul.f32 %v2488_v9, %v881_v15  ;;  %v690_v20 = vpop.f32.mrb[25].mxu0  ;;  %v883_v21 = vpop.f32.mrb[25].mxu1 }
 0x16f   :  { %2073 = vst [vmem:[#allocation8 + $0xb0] sm:$0xff] %v2251_v6  ;;  %2074 = vst [vmem:[#allocation8 + $0xb8] sm:$0xff] %v2252_v7  ;;  %v1438_v22 = vmul.f32 %v2490_v10, %v690_v20  ;;  %v1440_v23 = vmul.f32 %v2492_v11, %v883_v21  ;;  %v692_v24 = vpop.f32.mrb[26].mxu0  ;;  %v885_v25 = vpop.f32.mrb[26].mxu1 }
 0x170   :  { %v1587_v26 = vadd.f32 %v2494_v12, %v1437_v18  ;;  %v1589_v27 = vadd.f32 %v2496_v13, %v1439_v19  ;;  %v1441_v28 = vmul.f32 %v2486_v8, %v692_v24  ;;  %v1443_v29 = vmul.f32 %v2488_v9, %v885_v25  ;;  %v694_v30 = vpop.f32.mrb[27].mxu0  ;;  %v887_v31 = vpop.f32.mrb[27].mxu1 }
 0x171   :  { %v1588_v32 = vadd.f32 %v2498_v16, %v1438_v22  ;;  %v1590_v33 = vadd.f32 %v2500_v17, %v1440_v23  ;;  %v1442_v34 = vmul.f32 %v2490_v10, %v694_v30  ;;  %v1444_v35 = vmul.f32 %v2492_v11, %v887_v31 }
 0x172   :  { %v1591_v36 = vadd.f32 %v2494_v12, %v1441_v28  ;;  %v1593_v37 = vadd.f32 %v2496_v13, %v1443_v29 }
 0x173   :  { %v2253_v38 = vpack.c.bf16 %v1588_v32, %v1587_v26  ;;  %v2254_v39 = vpack.c.bf16 %v1590_v33, %v1589_v27  ;;  %v1592_v40 = vadd.f32 %v2498_v16, %v1442_v34  ;;  %v1594_v41 = vadd.f32 %v2500_v17, %v1444_v35 }
 0x175   :  { %2075 = vst [vmem:[#allocation8 + $0xc0] sm:$0xff] %v2253_v38  ;;  %2076 = vst [vmem:[#allocation8 + $0xc8] sm:$0xff] %v2254_v39  ;;  %v2255_v42 = vpack.c.bf16 %v1592_v40, %v1591_v36  ;;  %v2256_v43 = vpack.c.bf16 %v1594_v41, %v1593_v37  ;;  %v698_v44 = vpop.f32.mrb[28].mxu0  ;;  %v891_v45 = vpop.f32.mrb[28].mxu1 }
 0x176   :  { %v1445_v46 = vmul.f32 %v2486_v8, %v698_v44  ;;  %v1447_v47 = vmul.f32 %v2488_v9, %v891_v45  ;;  %v700_v48 = vpop.f32.mrb[29].mxu0  ;;  %v893_v49 = vpop.f32.mrb[29].mxu1 }
 0x177   :  { %2077 = vst [vmem:[#allocation8 + $0xd0] sm:$0xff] %v2255_v42  ;;  %2078 = vst [vmem:[#allocation8 + $0xd8] sm:$0xff] %v2256_v43  ;;  %v1446_v50 = vmul.f32 %v2490_v10, %v700_v48  ;;  %v1448_v51 = vmul.f32 %v2492_v11, %v893_v49  ;;  %v702_v52 = vpop.f32.mrb[30].mxu0  ;;  %v895_v53 = vpop.f32.mrb[30].mxu1 }
 0x178   :  { %v1595_v54 = vadd.f32 %v2494_v12, %v1445_v46  ;;  %v1597_v55 = vadd.f32 %v2496_v13, %v1447_v47  ;;  %v1449_v56 = vmul.f32 %v2486_v8, %v702_v52  ;;  %v1451_v57 = vmul.f32 %v2488_v9, %v895_v53  ;;  %v704_v58 = vpop.f32.mrb[31].mxu0  ;;  %v897_v59 = vpop.f32.mrb[31].mxu1 }
 0x179   :  { %v1596_v60 = vadd.f32 %v2498_v16, %v1446_v50  ;;  %v1598_v61 = vadd.f32 %v2500_v17, %v1448_v51  ;;  %v1450_v62 = vmul.f32 %v2490_v10, %v704_v58  ;;  %v1452_v63 = vmul.f32 %v2492_v11, %v897_v59 }
 0x17a   :  { %v1599_v0 = vadd.f32 %v2494_v12, %v1449_v56  ;;  %v1601_v1 = vadd.f32 %v2496_v13, %v1451_v57 }
 0x17b   :  { %v2257_v2 = vpack.c.bf16 %v1596_v60, %v1595_v54  ;;  %v2258_v3 = vpack.c.bf16 %v1598_v61, %v1597_v55  ;;  %v1600_v4 = vadd.f32 %v2498_v16, %v1450_v62  ;;  %v1602_v5 = vadd.f32 %v2500_v17, %v1452_v63 }
 0x17d   :  { %2079 = vst [vmem:[#allocation8 + $0xe0] sm:$0xff] %v2257_v2  ;;  %2080 = vst [vmem:[#allocation8 + $0xe8] sm:$0xff] %v2258_v3  ;;  %v2259_v6 = vpack.c.bf16 %v1600_v4, %v1599_v0  ;;  %v2260_v7 = vpack.c.bf16 %v1602_v5, %v1601_v1  ;;  %v708_v14 = vpop.f32.mrb[32].mxu0  ;;  %v901_v15 = vpop.f32.mrb[32].mxu1 }
 0x17e   :  { %v1453_v18 = vmul.f32 %v2486_v8, %v708_v14  ;;  %v1455_v19 = vmul.f32 %v2488_v9, %v901_v15  ;;  %v710_v20 = vpop.f32.mrb[33].mxu0  ;;  %v903_v21 = vpop.f32.mrb[33].mxu1 }
 0x17f   :  { %2081 = vst [vmem:[#allocation8 + $0xf0] sm:$0xff] %v2259_v6  ;;  %2082 = vst [vmem:[#allocation8 + $0xf8] sm:$0xff] %v2260_v7  ;;  %v1454_v22 = vmul.f32 %v2490_v10, %v710_v20  ;;  %v1456_v23 = vmul.f32 %v2492_v11, %v903_v21  ;;  %v712_v24 = vpop.f32.mrb[34].mxu0  ;;  %v905_v25 = vpop.f32.mrb[34].mxu1 }
 0x180   :  { %v1603_v26 = vadd.f32 %v2494_v12, %v1453_v18  ;;  %v1605_v27 = vadd.f32 %v2496_v13, %v1455_v19  ;;  %v1457_v28 = vmul.f32 %v2486_v8, %v712_v24  ;;  %v1459_v29 = vmul.f32 %v2488_v9, %v905_v25  ;;  %v714_v30 = vpop.f32.mrb[35].mxu0  ;;  %v907_v31 = vpop.f32.mrb[35].mxu1 }
 0x181   :  { %v1604_v32 = vadd.f32 %v2498_v16, %v1454_v22  ;;  %v1606_v33 = vadd.f32 %v2500_v17, %v1456_v23  ;;  %v1458_v34 = vmul.f32 %v2490_v10, %v714_v30  ;;  %v1460_v35 = vmul.f32 %v2492_v11, %v907_v31 }
 0x182   :  { %v1607_v36 = vadd.f32 %v2494_v12, %v1457_v28  ;;  %v1609_v37 = vadd.f32 %v2496_v13, %v1459_v29 }
 0x183   :  { %v2261_v38 = vpack.c.bf16 %v1604_v32, %v1603_v26  ;;  %v2262_v39 = vpack.c.bf16 %v1606_v33, %v1605_v27  ;;  %v1608_v40 = vadd.f32 %v2498_v16, %v1458_v34  ;;  %v1610_v41 = vadd.f32 %v2500_v17, %v1460_v35 }
 0x185   :  { %2083 = vst [vmem:[#allocation8 + $0x100] sm:$0xff] %v2261_v38  ;;  %2084 = vst [vmem:[#allocation8 + $0x108] sm:$0xff] %v2262_v39  ;;  %v2263_v42 = vpack.c.bf16 %v1608_v40, %v1607_v36  ;;  %v2264_v43 = vpack.c.bf16 %v1610_v41, %v1609_v37  ;;  %v718_v44 = vpop.f32.mrb[36].mxu0  ;;  %v911_v45 = vpop.f32.mrb[36].mxu1 }
 0x186   :  { %v1461_v46 = vmul.f32 %v2486_v8, %v718_v44  ;;  %v1463_v47 = vmul.f32 %v2488_v9, %v911_v45  ;;  %v720_v48 = vpop.f32.mrb[37].mxu0  ;;  %v913_v49 = vpop.f32.mrb[37].mxu1 }
 0x187   :  { %2085 = vst [vmem:[#allocation8 + $0x110] sm:$0xff] %v2263_v42  ;;  %2086 = vst [vmem:[#allocation8 + $0x118] sm:$0xff] %v2264_v43  ;;  %v1462_v50 = vmul.f32 %v2490_v10, %v720_v48  ;;  %v1464_v51 = vmul.f32 %v2492_v11, %v913_v49  ;;  %v722_v52 = vpop.f32.mrb[38].mxu0  ;;  %v915_v53 = vpop.f32.mrb[38].mxu1 }
 0x188   :  { %v1611_v54 = vadd.f32 %v2494_v12, %v1461_v46  ;;  %v1613_v55 = vadd.f32 %v2496_v13, %v1463_v47  ;;  %v1465_v56 = vmul.f32 %v2486_v8, %v722_v52  ;;  %v1467_v57 = vmul.f32 %v2488_v9, %v915_v53  ;;  %v724_v58 = vpop.f32.mrb[39].mxu0  ;;  %v917_v59 = vpop.f32.mrb[39].mxu1 }
 0x189   :  { %v1612_v60 = vadd.f32 %v2498_v16, %v1462_v50  ;;  %v1614_v61 = vadd.f32 %v2500_v17, %v1464_v51  ;;  %v1466_v62 = vmul.f32 %v2490_v10, %v724_v58  ;;  %v1468_v63 = vmul.f32 %v2492_v11, %v917_v59 }
 0x18a   :  { %v1615_v0 = vadd.f32 %v2494_v12, %v1465_v56  ;;  %v1617_v1 = vadd.f32 %v2496_v13, %v1467_v57 }
 0x18b   :  { %v2265_v2 = vpack.c.bf16 %v1612_v60, %v1611_v54  ;;  %v2266_v3 = vpack.c.bf16 %v1614_v61, %v1613_v55  ;;  %v1616_v4 = vadd.f32 %v2498_v16, %v1466_v62  ;;  %v1618_v5 = vadd.f32 %v2500_v17, %v1468_v63 }
 0x18d   :  { %2087 = vst [vmem:[#allocation8 + $0x120] sm:$0xff] %v2265_v2  ;;  %2088 = vst [vmem:[#allocation8 + $0x128] sm:$0xff] %v2266_v3  ;;  %v2267_v6 = vpack.c.bf16 %v1616_v4, %v1615_v0  ;;  %v2268_v7 = vpack.c.bf16 %v1618_v5, %v1617_v1  ;;  %v728_v14 = vpop.f32.mrb[40].mxu0  ;;  %v921_v15 = vpop.f32.mrb[40].mxu1 }
 0x18e   :  { %v1469_v18 = vmul.f32 %v2486_v8, %v728_v14  ;;  %v1471_v19 = vmul.f32 %v2488_v9, %v921_v15  ;;  %v730_v20 = vpop.f32.mrb[41].mxu0  ;;  %v923_v21 = vpop.f32.mrb[41].mxu1 }
 0x18f   :  { %2089 = vst [vmem:[#allocation8 + $0x130] sm:$0xff] %v2267_v6  ;;  %2090 = vst [vmem:[#allocation8 + $0x138] sm:$0xff] %v2268_v7  ;;  %v1470_v22 = vmul.f32 %v2490_v10, %v730_v20  ;;  %v1472_v23 = vmul.f32 %v2492_v11, %v923_v21  ;;  %v732_v24 = vpop.f32.mrb[42].mxu0  ;;  %v925_v25 = vpop.f32.mrb[42].mxu1 }
 0x190   :  { %v1619_v26 = vadd.f32 %v2494_v12, %v1469_v18  ;;  %v1621_v27 = vadd.f32 %v2496_v13, %v1471_v19  ;;  %v1473_v28 = vmul.f32 %v2486_v8, %v732_v24  ;;  %v1475_v29 = vmul.f32 %v2488_v9, %v925_v25  ;;  %v734_v30 = vpop.f32.mrb[43].mxu0  ;;  %v927_v31 = vpop.f32.mrb[43].mxu1 }
 0x191   :  { %v1620_v32 = vadd.f32 %v2498_v16, %v1470_v22  ;;  %v1622_v33 = vadd.f32 %v2500_v17, %v1472_v23  ;;  %v1474_v34 = vmul.f32 %v2490_v10, %v734_v30  ;;  %v1476_v35 = vmul.f32 %v2492_v11, %v927_v31 }
 0x192   :  { %v1623_v36 = vadd.f32 %v2494_v12, %v1473_v28  ;;  %v1625_v37 = vadd.f32 %v2496_v13, %v1475_v29 }
 0x193   :  { %v2269_v38 = vpack.c.bf16 %v1620_v32, %v1619_v26  ;;  %v2270_v39 = vpack.c.bf16 %v1622_v33, %v1621_v27  ;;  %v1624_v40 = vadd.f32 %v2498_v16, %v1474_v34  ;;  %v1626_v41 = vadd.f32 %v2500_v17, %v1476_v35 }
 0x195   :  { %2091 = vst [vmem:[#allocation8 + $0x140] sm:$0xff] %v2269_v38  ;;  %2092 = vst [vmem:[#allocation8 + $0x148] sm:$0xff] %v2270_v39  ;;  %v2271_v42 = vpack.c.bf16 %v1624_v40, %v1623_v36  ;;  %v2272_v43 = vpack.c.bf16 %v1626_v41, %v1625_v37  ;;  %v738_v44 = vpop.f32.mrb[44].mxu0  ;;  %v931_v45 = vpop.f32.mrb[44].mxu1 }
 0x196   :  { %v1477_v46 = vmul.f32 %v2486_v8, %v738_v44  ;;  %v1479_v47 = vmul.f32 %v2488_v9, %v931_v45  ;;  %v740_v48 = vpop.f32.mrb[45].mxu0  ;;  %v933_v49 = vpop.f32.mrb[45].mxu1 }
 0x197   :  { %2093 = vst [vmem:[#allocation8 + $0x150] sm:$0xff] %v2271_v42  ;;  %2094 = vst [vmem:[#allocation8 + $0x158] sm:$0xff] %v2272_v43  ;;  %v1478_v50 = vmul.f32 %v2490_v10, %v740_v48  ;;  %v1480_v51 = vmul.f32 %v2492_v11, %v933_v49  ;;  %v742_v52 = vpop.f32.mrb[46].mxu0  ;;  %v935_v53 = vpop.f32.mrb[46].mxu1 }
 0x198   :  { %v1627_v54 = vadd.f32 %v2494_v12, %v1477_v46  ;;  %v1629_v55 = vadd.f32 %v2496_v13, %v1479_v47  ;;  %v1481_v56 = vmul.f32 %v2486_v8, %v742_v52  ;;  %v1483_v57 = vmul.f32 %v2488_v9, %v935_v53  ;;  %v744_v58 = vpop.f32.mrb[47].mxu0  ;;  %v937_v59 = vpop.f32.mrb[47].mxu1 }
 0x199   :  { %v1628_v60 = vadd.f32 %v2498_v16, %v1478_v50  ;;  %v1630_v61 = vadd.f32 %v2500_v17, %v1480_v51  ;;  %v1482_v62 = vmul.f32 %v2490_v10, %v744_v58  ;;  %v1484_v63 = vmul.f32 %v2492_v11, %v937_v59 }
 0x19a   :  { %v1631_v0 = vadd.f32 %v2494_v12, %v1481_v56  ;;  %v1633_v1 = vadd.f32 %v2496_v13, %v1483_v57 }
 0x19b   :  { %v2273_v2 = vpack.c.bf16 %v1628_v60, %v1627_v54  ;;  %v2274_v3 = vpack.c.bf16 %v1630_v61, %v1629_v55  ;;  %v1632_v4 = vadd.f32 %v2498_v16, %v1482_v62  ;;  %v1634_v5 = vadd.f32 %v2500_v17, %v1484_v63 }
 0x19d   :  { %2095 = vst [vmem:[#allocation8 + $0x160] sm:$0xff] %v2273_v2  ;;  %2096 = vst [vmem:[#allocation8 + $0x168] sm:$0xff] %v2274_v3  ;;  %v2275_v6 = vpack.c.bf16 %v1632_v4, %v1631_v0  ;;  %v2276_v7 = vpack.c.bf16 %v1634_v5, %v1633_v1  ;;  %v748_v14 = vpop.f32.mrb[48].mxu0  ;;  %v941_v15 = vpop.f32.mrb[48].mxu1 }
 0x19e   :  { %v1485_v18 = vmul.f32 %v2486_v8, %v748_v14  ;;  %v1487_v19 = vmul.f32 %v2488_v9, %v941_v15  ;;  %v750_v20 = vpop.f32.mrb[49].mxu0  ;;  %v943_v21 = vpop.f32.mrb[49].mxu1 }
 0x19f   :  { %2097 = vst [vmem:[#allocation8 + $0x170] sm:$0xff] %v2275_v6  ;;  %2098 = vst [vmem:[#allocation8 + $0x178] sm:$0xff] %v2276_v7  ;;  %v1486_v22 = vmul.f32 %v2490_v10, %v750_v20  ;;  %v1488_v23 = vmul.f32 %v2492_v11, %v943_v21  ;;  %v752_v24 = vpop.f32.mrb[50].mxu0  ;;  %v945_v25 = vpop.f32.mrb[50].mxu1 }
 0x1a0   :  { %v1635_v26 = vadd.f32 %v2494_v12, %v1485_v18  ;;  %v1637_v27 = vadd.f32 %v2496_v13, %v1487_v19  ;;  %v1489_v28 = vmul.f32 %v2486_v8, %v752_v24  ;;  %v1491_v29 = vmul.f32 %v2488_v9, %v945_v25  ;;  %v754_v30 = vpop.f32.mrb[51].mxu0  ;;  %v947_v31 = vpop.f32.mrb[51].mxu1 }
 0x1a1   :  { %v1636_v32 = vadd.f32 %v2498_v16, %v1486_v22  ;;  %v1638_v33 = vadd.f32 %v2500_v17, %v1488_v23  ;;  %v1490_v34 = vmul.f32 %v2490_v10, %v754_v30  ;;  %v1492_v35 = vmul.f32 %v2492_v11, %v947_v31 }
 0x1a2   :  { %v1639_v36 = vadd.f32 %v2494_v12, %v1489_v28  ;;  %v1641_v37 = vadd.f32 %v2496_v13, %v1491_v29 }
 0x1a3   :  { %v2277_v38 = vpack.c.bf16 %v1636_v32, %v1635_v26  ;;  %v2278_v39 = vpack.c.bf16 %v1638_v33, %v1637_v27  ;;  %v1640_v40 = vadd.f32 %v2498_v16, %v1490_v34  ;;  %v1642_v41 = vadd.f32 %v2500_v17, %v1492_v35 }
 0x1a5   :  { %2099 = vst [vmem:[#allocation8 + $0x180] sm:$0xff] %v2277_v38  ;;  %2100 = vst [vmem:[#allocation8 + $0x188] sm:$0xff] %v2278_v39  ;;  %v2279_v42 = vpack.c.bf16 %v1640_v40, %v1639_v36  ;;  %v2280_v43 = vpack.c.bf16 %v1642_v41, %v1641_v37  ;;  %v758_v44 = vpop.f32.mrb[52].mxu0  ;;  %v951_v45 = vpop.f32.mrb[52].mxu1 }
 0x1a6   :  { %v1493_v46 = vmul.f32 %v2486_v8, %v758_v44  ;;  %v1495_v47 = vmul.f32 %v2488_v9, %v951_v45  ;;  %v760_v48 = vpop.f32.mrb[53].mxu0  ;;  %v953_v49 = vpop.f32.mrb[53].mxu1 }
 0x1a7   :  { %2101 = vst [vmem:[#allocation8 + $0x190] sm:$0xff] %v2279_v42  ;;  %2102 = vst [vmem:[#allocation8 + $0x198] sm:$0xff] %v2280_v43  ;;  %v1494_v50 = vmul.f32 %v2490_v10, %v760_v48  ;;  %v1496_v51 = vmul.f32 %v2492_v11, %v953_v49  ;;  %v762_v52 = vpop.f32.mrb[54].mxu0  ;;  %v955_v53 = vpop.f32.mrb[54].mxu1 }
 0x1a8   :  { %v1643_v54 = vadd.f32 %v2494_v12, %v1493_v46  ;;  %v1645_v55 = vadd.f32 %v2496_v13, %v1495_v47  ;;  %v1497_v56 = vmul.f32 %v2486_v8, %v762_v52  ;;  %v1499_v57 = vmul.f32 %v2488_v9, %v955_v53  ;;  %v764_v58 = vpop.f32.mrb[55].mxu0  ;;  %v957_v59 = vpop.f32.mrb[55].mxu1 }
 0x1a9   :  { %v1644_v60 = vadd.f32 %v2498_v16, %v1494_v50  ;;  %v1646_v61 = vadd.f32 %v2500_v17, %v1496_v51  ;;  %v1498_v62 = vmul.f32 %v2490_v10, %v764_v58  ;;  %v1500_v63 = vmul.f32 %v2492_v11, %v957_v59 }
 0x1aa   :  { %v1647_v0 = vadd.f32 %v2494_v12, %v1497_v56  ;;  %v1649_v1 = vadd.f32 %v2496_v13, %v1499_v57 }
 0x1ab   :  { %v2281_v2 = vpack.c.bf16 %v1644_v60, %v1643_v54  ;;  %v2282_v3 = vpack.c.bf16 %v1646_v61, %v1645_v55  ;;  %v1648_v4 = vadd.f32 %v2498_v16, %v1498_v62  ;;  %v1650_v5 = vadd.f32 %v2500_v17, %v1500_v63 }
 0x1ad   :  { %2103 = vst [vmem:[#allocation8 + $0x1a0] sm:$0xff] %v2281_v2  ;;  %2104 = vst [vmem:[#allocation8 + $0x1a8] sm:$0xff] %v2282_v3  ;;  %v2283_v6 = vpack.c.bf16 %v1648_v4, %v1647_v0  ;;  %v2284_v7 = vpack.c.bf16 %v1650_v5, %v1649_v1  ;;  %v768_v14 = vpop.f32.mrb[56].mxu0  ;;  %v961_v15 = vpop.f32.mrb[56].mxu1 }
 0x1ae   :  { %v1501_v18 = vmul.f32 %v2486_v8, %v768_v14  ;;  %v1503_v19 = vmul.f32 %v2488_v9, %v961_v15  ;;  %v770_v20 = vpop.f32.mrb[57].mxu0  ;;  %v963_v21 = vpop.f32.mrb[57].mxu1 }
 0x1af   :  { %2105 = vst [vmem:[#allocation8 + $0x1b0] sm:$0xff] %v2283_v6  ;;  %2106 = vst [vmem:[#allocation8 + $0x1b8] sm:$0xff] %v2284_v7  ;;  %v1502_v22 = vmul.f32 %v2490_v10, %v770_v20  ;;  %v1504_v23 = vmul.f32 %v2492_v11, %v963_v21  ;;  %v772_v24 = vpop.f32.mrb[58].mxu0  ;;  %v965_v25 = vpop.f32.mrb[58].mxu1 }
 0x1b0   :  { %v1651_v26 = vadd.f32 %v2494_v12, %v1501_v18  ;;  %v1653_v27 = vadd.f32 %v2496_v13, %v1503_v19  ;;  %v1505_v28 = vmul.f32 %v2486_v8, %v772_v24  ;;  %v1507_v29 = vmul.f32 %v2488_v9, %v965_v25  ;;  %v774_v30 = vpop.f32.mrb[59].mxu0  ;;  %v967_v31 = vpop.f32.mrb[59].mxu1 }
 0x1b1   :  { %v1652_v32 = vadd.f32 %v2498_v16, %v1502_v22  ;;  %v1654_v33 = vadd.f32 %v2500_v17, %v1504_v23  ;;  %v1506_v34 = vmul.f32 %v2490_v10, %v774_v30  ;;  %v1508_v35 = vmul.f32 %v2492_v11, %v967_v31 }
 0x1b2   :  { %v1655_v36 = vadd.f32 %v2494_v12, %v1505_v28  ;;  %v1657_v37 = vadd.f32 %v2496_v13, %v1507_v29 }
 0x1b3   :  { %v2285_v38 = vpack.c.bf16 %v1652_v32, %v1651_v26  ;;  %v2286_v39 = vpack.c.bf16 %v1654_v33, %v1653_v27  ;;  %v1656_v40 = vadd.f32 %v2498_v16, %v1506_v34  ;;  %v1658_v41 = vadd.f32 %v2500_v17, %v1508_v35 }
 0x1b5   :  { %2107 = vst [vmem:[#allocation8 + $0x1c0] sm:$0xff] %v2285_v38  ;;  %2108 = vst [vmem:[#allocation8 + $0x1c8] sm:$0xff] %v2286_v39  ;;  %v2287_v42 = vpack.c.bf16 %v1656_v40, %v1655_v36  ;;  %v2288_v43 = vpack.c.bf16 %v1658_v41, %v1657_v37  ;;  %v778_v44 = vpop.f32.mrb[60].mxu0  ;;  %v971_v45 = vpop.f32.mrb[60].mxu1 }
 0x1b6   :  { %v1509_v46 = vmul.f32 %v2486_v8, %v778_v44  ;;  %v1511_v47 = vmul.f32 %v2488_v9, %v971_v45  ;;  %v780_v48 = vpop.f32.mrb[61].mxu0  ;;  %v973_v49 = vpop.f32.mrb[61].mxu1 }
 0x1b7   :  { %2109 = vst [vmem:[#allocation8 + $0x1d0] sm:$0xff] %v2287_v42  ;;  %2110 = vst [vmem:[#allocation8 + $0x1d8] sm:$0xff] %v2288_v43  ;;  %v1510_v50 = vmul.f32 %v2490_v10, %v780_v48  ;;  %v1512_v51 = vmul.f32 %v2492_v11, %v973_v49  ;;  %v782_v52 = vpop.f32.mrb[62].mxu0  ;;  %v975_v53 = vpop.f32.mrb[62].mxu1 }
 0x1b8   :  { %v1659_v54 = vadd.f32 %v2494_v12, %v1509_v46  ;;  %v1661_v55 = vadd.f32 %v2496_v13, %v1511_v47  ;;  %v1513_v56 = vmul.f32 %v2486_v8, %v782_v52  ;;  %v1515_v57 = vmul.f32 %v2488_v9, %v975_v53  ;;  %v784_v58 = vpop.f32.mrb[63].mxu0  ;;  %v977_v59 = vpop.f32.mrb[63].mxu1 }
 0x1b9   :  { %v1660_v60 = vadd.f32 %v2498_v16, %v1510_v50  ;;  %v1662_v61 = vadd.f32 %v2500_v17, %v1512_v51  ;;  %v1514_v62 = vmul.f32 %v2490_v10, %v784_v58  ;;  %v1516_v63 = vmul.f32 %v2492_v11, %v977_v59 }
 0x1ba   :  { %v1663_v0 = vadd.f32 %v2494_v12, %v1513_v56  ;;  %v1665_v1 = vadd.f32 %v2496_v13, %v1515_v57 }
 0x1bb   :  { %v2289_v2 = vpack.c.bf16 %v1660_v60, %v1659_v54  ;;  %v2290_v8 = vpack.c.bf16 %v1662_v61, %v1661_v55  ;;  %v1664_v9 = vadd.f32 %v2498_v16, %v1514_v62  ;;  %v1666_v3 = vadd.f32 %v2500_v17, %v1516_v63 }
 0x1bd   :  { %2111 = vst [vmem:[#allocation8 + $0x1e0] sm:$0xff] %v2289_v2  ;;  %2112 = vst [vmem:[#allocation8 + $0x1e8] sm:$0xff] %v2290_v8  ;;  %v2291_v4 = vpack.c.bf16 %v1664_v9, %v1663_v0  ;;  %v2292_v5 = vpack.c.bf16 %v1666_v3, %v1665_v1 }
 0x1bf   :  { %2113 = vst [vmem:[#allocation8 + $0x1f0] sm:$0xff] %v2291_v4  ;;  %2114 = vst [vmem:[#allocation8 + $0x1f8] sm:$0xff] %v2292_v5 }
 0x1c0   :  { %2405 = shalt.err (!%p2402_p6)
}
 0x1c1   :  { %s2406_s22 = scalar_lea.hbm %s2774_s4, 8192 }
 0x1c2   :  { %p2407_p7 = scmp.ne.s32.totalorder %s2774_s4, %s2406_s22  ;;  %p2410_p8 = scmp.lt.u32.totalorder %s2406_s22, %s2774_s4 }
 0x1c4   :  { %p2412_p9 = pnand %p2410_p8, %p2407_p7 }
 0x1c6   :  { %2415 = shalt.err (!%p2412_p9)
}
 0x1c7   :  { %s2429_s27 = smov 256   ;;  %s2430_s28 = smov 16  }
 0x1c8   :  { %2126 = dma.vmem_to_hbm [thread:$0]  %s2121_s3, 8192, %s2774_s4, [#allocation5], %s2429_s27, %s2429_s27, %s2430_s28  }
 0x1c9   :  { %2420 = dma.done.wait [#allocation5], 8192  }
 0x1ca   :  { %2421 = vsyncadd [#allocation5], 4294959104 }
 0x1cb   :  { %2130 = vsyncpa [#allocation4], 1 }
 0x1cc   :  { %2131 = vsyncpa [#allocation7], 1 }
 0x1cd   :  { %2132 = vsyncpa [#allocation5], 1 }

</bundles_post_ra>
